<compile_context>
chip_gen: v6e
topology: v6e:2x2x1
jax: 0.10.0
libtpu: 0.0.40
codegen_flags: <defaults>
</compile_context>

<pallas_src>
import jax
import jax.numpy as jnp
from jax import lax
from jax.experimental import pallas as pl
from jax.experimental.pallas import tpu as pltpu

_LOG2E = 1.4426950408889634


def _make_flash_attn_kernel(scale_log2e, matmul_dtype, exp_dtype):
    """Builds the kernel body with compile-time constants closed over."""

    def kernel(q_ref, k_ref, v_ref, o_ref, qs_sc, m_sc, l_sc, acc_sc):
        # q_ref: (1, TQ, Dp)  k_ref/v_ref: (1, TK, Dp)  o_ref: (1, TQ, Dp)
        # qs_sc: (TQ, Dp) matmul_dtype   m_sc/l_sc: (TQ, 1) f32
        # acc_sc: (TQ, Dp) f32
        kv = pl.program_id(2)

        @pl.when(kv == 0)
        def _init():
            # Fold 1/sqrt(d_k) * log2(e) into Q once per query tile (hoisted
            # out of the KV reduction loop).
            qs_sc[...] = (q_ref[0].astype(jnp.float32) * scale_log2e).astype(
                matmul_dtype)
            m_sc[...] = jnp.full_like(m_sc, -jnp.inf)
            l_sc[...] = jnp.zeros_like(l_sc)
            acc_sc[...] = jnp.zeros_like(acc_sc)

        k = k_ref[0].astype(matmul_dtype)          # (TK, Dp)
        v = v_ref[0].astype(matmul_dtype)          # (TK, Dp)

        # Scores in the log2 domain: s = (Q K^T / sqrt(d)) * log2(e).
        # Contract over Dp without an explicit transpose.
        s = lax.dot_general(
            qs_sc[...], k,
            dimension_numbers=(((1,), (1,)), ((), ())),
            preferred_element_type=jnp.float32,
        )                                          # (TQ, TK) f32

        # Online softmax update (base-2 exponentials).
        m_prev = m_sc[...]                                    # (TQ, 1)
        m_new = jnp.maximum(m_prev, jnp.max(s, axis=-1, keepdims=True))
        alpha = jnp.exp2(m_prev - m_new)                      # (TQ, 1) f32
        p = jnp.exp2((s - m_new).astype(exp_dtype)).astype(matmul_dtype)

        l_sc[...] = alpha * l_sc[...] + jnp.sum(
            p, axis=-1, keepdims=True, dtype=jnp.float32)
        acc_sc[...] = alpha * acc_sc[...] + lax.dot_general(
            p, v,
            dimension_numbers=(((1,), (0,)), ((), ())),
            preferred_element_type=jnp.float32,
        )
        m_sc[...] = m_new

        @pl.when(kv == pl.num_programs(2) - 1)
        def _finalize():
            inv_l = pl.reciprocal(l_sc[...], approx=True)     # EUP vrcp, once/tile
            o_ref[0] = (acc_sc[...] * inv_l).astype(o_ref.dtype)

    return kernel


def _pick_tile(s, target, align):
    """Largest divisor of s that is <= target and a multiple of `align`.

    Falls back to coarser alignment (8, then any divisor) for awkward S rather
    than silently returning the full-sequence extent (which could blow VMEM).
    """
    if s <= target:
        return s
    for a in (align, 8, 1):
        t = (target // a) * a
        while t >= a:
            if s % t == 0:
                return t
            t -= a
    return s  # unreachable: align=1 always finds a divisor


def calculate_attention(
    Q, K, V, *,
    tq_target=512, tk_target=1024,
    matmul_dtype=jnp.bfloat16,
    exp_dtype=jnp.bfloat16,        # use jnp.float32 on v5e (no bf16 EUP path)
    kv_buffer_count=2,             # use 3 on v5e to hide K/V DMA
    vmem_limit_bytes=32 * 1024 * 1024,
):
    """Q, K, V: (B, H, S, D). Returns softmax(Q K^T / sqrt(D)) @ V, (B, H, S, D)."""
    B, H, S, D = Q.shape
    BH = B * H
    out_dtype = Q.dtype

    q = Q.reshape(BH, S, D)
    k = K.reshape(BH, S, D)
    v = V.reshape(BH, S, D)

    # Lane-dense head dim: zero-pad D up to a multiple of 128 (zero columns are
    # mathematically inert for both matmuls); slice the pad off at the end.
    Dp = pl.cdiv(D, 128) * 128
    if Dp != D:
        pad = [(0, 0), (0, 0), (0, Dp - D)]
        q = jnp.pad(q, pad)
        k = jnp.pad(k, pad)
        v = jnp.pad(v, pad)

    TQ = _pick_tile(S, tq_target, 16)    # sublane dim of s/p: multiple of 16 (bf16)
    TK = _pick_tile(S, tk_target, 128)   # lane dim of s/p & PV contraction: mult of 128
    n_q = S // TQ
    n_k = S // TK

    # Scale uses the ORIGINAL head dim (pad columns are zero and don't count).
    scale_log2e = (1.0 / (float(D) ** 0.5)) * _LOG2E

    kernel = _make_flash_attn_kernel(scale_log2e, matmul_dtype, exp_dtype)

    # Q / output tiles depend only on (batch-head, q-tile); K/V stream over kv.
    q_spec = pl.BlockSpec((1, TQ, Dp), lambda b, qi, ki: (b, qi, 0))
    kv_kwargs = {}
    if kv_buffer_count is not None and kv_buffer_count != 2:
        kv_kwargs["pipeline_mode"] = pl.Buffered(kv_buffer_count)
    kv_spec = pl.BlockSpec((1, TK, Dp), lambda b, qi, ki: (b, ki, 0), **kv_kwargs)
    o_spec = pl.BlockSpec((1, TQ, Dp), lambda b, qi, ki: (b, qi, 0))

    out = pl.pallas_call(
        kernel,
        out_shape=jax.ShapeDtypeStruct((BH, S, Dp), out_dtype),
        grid_spec=pltpu.PrefetchScalarGridSpec(
            num_scalar_prefetch=0,
            grid=(BH, n_q, n_k),
            in_specs=[q_spec, kv_spec, kv_spec],
            out_specs=o_spec,
            scratch_shapes=[
                pltpu.VMEM((TQ, Dp), matmul_dtype),   # scaled Q (hoisted)
                pltpu.VMEM((TQ, 1), jnp.float32),     # running max m (log2 domain)
                pltpu.VMEM((TQ, 1), jnp.float32),     # running denom l
                pltpu.VMEM((TQ, Dp), jnp.float32),    # f32 accumulator
            ],
        ),
        compiler_params=pltpu.CompilerParams(
            dimension_semantics=("parallel", "parallel", "arbitrary"),
            vmem_limit_bytes=vmem_limit_bytes,
        ),
    )(q, k, v)

    if Dp != D:
        out = out[..., :D]
    return out.reshape(B, H, S, D)


def _reference_attention(Q, K, V):
    d_k = Q.shape[-1]
    q32, k32, v32 = (x.astype(jnp.float32) for x in (Q, K, V))
    scores = jnp.einsum("bhqd,bhkd->bhqk", q32, k32) / jnp.sqrt(jnp.float32(d_k))
    p = jax.nn.softmax(scores, axis=-1)
    return jnp.einsum("bhqk,bhkd->bhqd", p, v32)


if __name__ == "__main__":
    key = jax.random.PRNGKey(0)
    kq, kk, kv = jax.random.split(key, 3)

    B, H, S, D = 2, 2, 8, 32
    Q = jax.random.normal(kq, (B, H, S, D), dtype=jnp.float32)
    K = jax.random.normal(kk, (B, H, S, D), dtype=jnp.float32)
    V = jax.random.normal(kv, (B, H, S, D), dtype=jnp.float32)

    out = calculate_attention(Q, K, V)
    jax.block_until_ready(out)

    ref = _reference_attention(Q, K, V)
    assert out.shape == (B, H, S, D)
    # bf16 MXU operands + bf16 exp2 + online softmax => bf16-level tolerance.
    assert jnp.allclose(out.astype(jnp.float32), ref, atol=5e-2, rtol=5e-2), \
        "mismatch vs reference"

    print("KERNEL_OK")
</pallas_src>

<mosaic_0001>
module attributes {stable_mosaic.version = 11 : i64} {
  func.func @kernel(%arg0: i32, %arg1: i32, %arg2: i32, %arg3: memref<1x8x128xf32, #tpu.memory_space<vmem>>, %arg4: memref<1x8x128xf32, #tpu.memory_space<vmem>>, %arg5: memref<1x8x128xf32, #tpu.memory_space<vmem>>, %arg6: memref<1x8x128xf32, #tpu.memory_space<vmem>>, %arg7: memref<8x128xbf16, #tpu.memory_space<vmem>>, %arg8: memref<8x1xf32, #tpu.memory_space<vmem>>, %arg9: memref<8x1xf32, #tpu.memory_space<vmem>>, %arg10: memref<8x128xf32, #tpu.memory_space<vmem>>) attributes {dimension_semantics = [#tpu.dimension_semantics<parallel>, #tpu.dimension_semantics<parallel>, #tpu.dimension_semantics<arbitrary>], iteration_bounds = array<i64: 4, 1, 1>, scalar_prefetch = 0 : i64, scratch_operands = 4 : i64, tpu.core_type = #tpu.core_type<tc>, window_params = [{transform_indices = @transform_0, window_bounds = array<i64: 1, 8, 128>}, {transform_indices = @transform_1, window_bounds = array<i64: 1, 8, 128>}, {transform_indices = @transform_2, window_bounds = array<i64: 1, 8, 128>}, {transform_indices = @transform_3, window_bounds = array<i64: 1, 8, 128>}]} {
    %c0_i32 = arith.constant 0 : i32
    %0 = arith.cmpi eq, %arg2, %c0_i32 : i32
    %1 = arith.extui %0 : i1 to i32
    %c0_i32_0 = arith.constant 0 : i32
    %2 = arith.cmpi ne, %1, %c0_i32_0 : i32
    scf.if %2 {
      %c0_25 = arith.constant 0 : index
      %c0_26 = arith.constant 0 : index
      %c0_27 = arith.constant 0 : index
      %38 = vector.load %arg3[%c0_25, %c0_26, %c0_27] : memref<1x8x128xf32, #tpu.memory_space<vmem>>, vector<1x8x128xf32>
      %39 = vector.shape_cast %38 : vector<1x8x128xf32> to vector<8x128xf32>
      %cst_28 = arith.constant 0.255034864 : f32
      %40 = vector.broadcast %cst_28 : f32 to vector<8x128xf32>
      %41 = arith.mulf %39, %40 : vector<8x128xf32>
      %42 = arith.truncf %41 : vector<8x128xf32> to vector<8x128xbf16>
      %c0_29 = arith.constant 0 : index
      %c0_30 = arith.constant 0 : index
      %43 = vector.load %arg7[%c0_29, %c0_30] : memref<8x128xbf16, #tpu.memory_space<vmem>>, vector<8x128xbf16>
      tpu.vector_store %arg7[%c0_29, %c0_30], %42 {strides = array<i32>} : memref<8x128xbf16, #tpu.memory_space<vmem>>, vector<8x128xbf16>,
      %cst_31 = arith.constant 0xFF800000 : f32
      %44 = vector.broadcast %cst_31 : f32 to vector<8x1xf32>
      %c0_32 = arith.constant 0 : index
      %c0_33 = arith.constant 0 : index
      %45 = vector.load %arg8[%c0_32, %c0_33] : memref<8x1xf32, #tpu.memory_space<vmem>>, vector<8x1xf32>
      tpu.vector_store %arg8[%c0_32, %c0_33], %44 {strides = array<i32>} : memref<8x1xf32, #tpu.memory_space<vmem>>, vector<8x1xf32>,
      %cst_34 = arith.constant 0.000000e+00 : f32
      %46 = vector.broadcast %cst_34 : f32 to vector<8x1xf32>
      %c0_35 = arith.constant 0 : index
      %c0_36 = arith.constant 0 : index
      %47 = vector.load %arg9[%c0_35, %c0_36] : memref<8x1xf32, #tpu.memory_space<vmem>>, vector<8x1xf32>
      tpu.vector_store %arg9[%c0_35, %c0_36], %46 {strides = array<i32>} : memref<8x1xf32, #tpu.memory_space<vmem>>, vector<8x1xf32>,
      %cst_37 = arith.constant 0.000000e+00 : f32
      %48 = vector.broadcast %cst_37 : f32 to vector<8x128xf32>
      %c0_38 = arith.constant 0 : index
      %c0_39 = arith.constant 0 : index
      %49 = vector.load %arg10[%c0_38, %c0_39] : memref<8x128xf32, #tpu.memory_space<vmem>>, vector<8x128xf32>
      tpu.vector_store %arg10[%c0_38, %c0_39], %48 {strides = array<i32>} : memref<8x128xf32, #tpu.memory_space<vmem>>, vector<8x128xf32>,
    } else {
    }
    %c0 = arith.constant 0 : index
    %c0_1 = arith.constant 0 : index
    %c0_2 = arith.constant 0 : index
    %3 = vector.load %arg4[%c0, %c0_1, %c0_2] : memref<1x8x128xf32, #tpu.memory_space<vmem>>, vector<1x8x128xf32>
    %4 = vector.shape_cast %3 : vector<1x8x128xf32> to vector<8x128xf32>
    %5 = arith.truncf %4 : vector<8x128xf32> to vector<8x128xbf16>
    %c0_3 = arith.constant 0 : index
    %c0_4 = arith.constant 0 : index
    %c0_5 = arith.constant 0 : index
    %6 = vector.load %arg5[%c0_3, %c0_4, %c0_5] : memref<1x8x128xf32, #tpu.memory_space<vmem>>, vector<1x8x128xf32>
    %7 = vector.shape_cast %6 : vector<1x8x128xf32> to vector<8x128xf32>
    %8 = arith.truncf %7 : vector<8x128xf32> to vector<8x128xbf16>
    %c0_6 = arith.constant 0 : index
    %c0_7 = arith.constant 0 : index
    %9 = vector.load %arg7[%c0_6, %c0_7] : memref<8x128xbf16, #tpu.memory_space<vmem>>, vector<8x128xbf16>
    %cst = arith.constant dense<0.000000e+00> : vector<8x8xf32>
    %10 = tpu.matmul %9, %5, %cst {dimension_numbers = #tpu.dot_dimension_numbers<[1], [1], [0], [0], [0, 0, 1, 0], [], []>} : vector<8x128xbf16>, vector<8x128xbf16>, vector<8x8xf32> -> vector<8x8xf32>
    %c0_8 = arith.constant 0 : index
    %c0_9 = arith.constant 0 : index
    %11 = vector.load %arg8[%c0_8, %c0_9] : memref<8x1xf32, #tpu.memory_space<vmem>>, vector<8x1xf32>
    %cst_10 = arith.constant dense<0xFF800000> : vector<8xf32>
    %12 = vector.multi_reduction <maximumf>, %10, %cst_10 [1] : vector<8x8xf32> to vector<8xf32>
    %13 = vector.shape_cast %12 : vector<8xf32> to vector<8x1xf32>
    %14 = arith.maximumf %11, %13 : vector<8x1xf32>
    %15 = arith.subf %11, %14 : vector<8x1xf32>
    %16 = math.exp2 %15 : vector<8x1xf32>
    %17 = vector.broadcast %14 : vector<8x1xf32> to vector<8x8xf32>
    %18 = arith.subf %10, %17 : vector<8x8xf32>
    %19 = arith.truncf %18 : vector<8x8xf32> to vector<8x8xbf16>
    %20 = math.exp2 %19 : vector<8x8xbf16>
    %c0_11 = arith.constant 0 : index
    %c0_12 = arith.constant 0 : index
    %21 = vector.load %arg9[%c0_11, %c0_12] : memref<8x1xf32, #tpu.memory_space<vmem>>, vector<8x1xf32>
    %22 = arith.mulf %16, %21 : vector<8x1xf32>
    %23 = arith.extf %20 : vector<8x8xbf16> to vector<8x8xf32>
    %cst_13 = arith.constant dense<0.000000e+00> : vector<8xf32>
    %24 = vector.multi_reduction <add>, %23, %cst_13 [1] : vector<8x8xf32> to vector<8xf32>
    %25 = vector.shape_cast %24 : vector<8xf32> to vector<8x1xf32>
    %26 = arith.addf %22, %25 : vector<8x1xf32>
    %c0_14 = arith.constant 0 : index
    %c0_15 = arith.constant 0 : index
    %27 = vector.load %arg9[%c0_14, %c0_15] : memref<8x1xf32, #tpu.memory_space<vmem>>, vector<8x1xf32>
    tpu.vector_store %arg9[%c0_14, %c0_15], %26 {strides = array<i32>} : memref<8x1xf32, #tpu.memory_space<vmem>>, vector<8x1xf32>,
    %c0_16 = arith.constant 0 : index
    %c0_17 = arith.constant 0 : index
    %28 = vector.load %arg10[%c0_16, %c0_17] : memref<8x128xf32, #tpu.memory_space<vmem>>, vector<8x128xf32>
    %29 = vector.broadcast %16 : vector<8x1xf32> to vector<8x128xf32>
    %30 = arith.mulf %29, %28 : vector<8x128xf32>
    %cst_18 = arith.constant dense<0.000000e+00> : vector<8x128xf32>
    %31 = tpu.matmul %20, %8, %cst_18 {dimension_numbers = #tpu.dot_dimension_numbers<[1], [0], [0], [1], [0, 0, 1, 1], [], []>} : vector<8x8xbf16>, vector<8x128xbf16>, vector<8x128xf32> -> vector<8x128xf32>
    %32 = arith.addf %30, %31 : vector<8x128xf32>
    %c0_19 = arith.constant 0 : index
    %c0_20 = arith.constant 0 : index
    %33 = vector.load %arg10[%c0_19, %c0_20] : memref<8x128xf32, #tpu.memory_space<vmem>>, vector<8x128xf32>
    tpu.vector_store %arg10[%c0_19, %c0_20], %32 {strides = array<i32>} : memref<8x128xf32, #tpu.memory_space<vmem>>, vector<8x128xf32>,
    %c0_21 = arith.constant 0 : index
    %c0_22 = arith.constant 0 : index
    %34 = vector.load %arg8[%c0_21, %c0_22] : memref<8x1xf32, #tpu.memory_space<vmem>>, vector<8x1xf32>
    tpu.vector_store %arg8[%c0_21, %c0_22], %14 {strides = array<i32>} : memref<8x1xf32, #tpu.memory_space<vmem>>, vector<8x1xf32>,
    %c0_i32_23 = arith.constant 0 : i32
    %35 = arith.cmpi eq, %arg2, %c0_i32_23 : i32
    %36 = arith.extui %35 : i1 to i32
    %c0_i32_24 = arith.constant 0 : i32
    %37 = arith.cmpi ne, %36, %c0_i32_24 : i32
    scf.if %37 {
      %c0_25 = arith.constant 0 : index
      %c0_26 = arith.constant 0 : index
      %38 = vector.load %arg9[%c0_25, %c0_26] : memref<8x1xf32, #tpu.memory_space<vmem>>, vector<8x1xf32>
      %39 = tpu.reciprocal %38 {approx = true} : vector<8x1xf32> -> vector<8x1xf32>
      %c0_27 = arith.constant 0 : index
      %c0_28 = arith.constant 0 : index
      %40 = vector.load %arg10[%c0_27, %c0_28] : memref<8x128xf32, #tpu.memory_space<vmem>>, vector<8x128xf32>
      %41 = vector.broadcast %39 : vector<8x1xf32> to vector<8x128xf32>
      %42 = arith.mulf %40, %41 : vector<8x128xf32>
      %c0_29 = arith.constant 0 : index
      %c0_30 = arith.constant 0 : index
      %c0_31 = arith.constant 0 : index
      %43 = vector.load %arg6[%c0_29, %c0_30, %c0_31] : memref<1x8x128xf32, #tpu.memory_space<vmem>>, vector<1x8x128xf32>
      %44 = vector.shape_cast %43 : vector<1x8x128xf32> to vector<8x128xf32>
      %45 = vector.shape_cast %42 : vector<8x128xf32> to vector<1x8x128xf32>
      tpu.vector_store %arg6[%c0_29, %c0_30, %c0_31], %45 {strides = array<i32>} : memref<1x8x128xf32, #tpu.memory_space<vmem>>, vector<1x8x128xf32>,
    } else {
    }
    return
  }
  func.func @transform_0(%arg0: i32, %arg1: i32, %arg2: i32) -> (i32, i32, i32) {
    %c0_i32 = arith.constant 0 : i32
    %c0_i32_0 = arith.constant 0 : i32
    return %arg0, %arg1, %c0_i32 : i32, i32, i32
  }
  func.func @transform_1(%arg0: i32, %arg1: i32, %arg2: i32) -> (i32, i32, i32) {
    %c0_i32 = arith.constant 0 : i32
    %c0_i32_0 = arith.constant 0 : i32
    return %arg0, %arg2, %c0_i32 : i32, i32, i32
  }
  func.func @transform_2(%arg0: i32, %arg1: i32, %arg2: i32) -> (i32, i32, i32) {
    %c0_i32 = arith.constant 0 : i32
    %c0_i32_0 = arith.constant 0 : i32
    return %arg0, %arg2, %c0_i32 : i32, i32, i32
  }
  func.func @transform_3(%arg0: i32, %arg1: i32, %arg2: i32) -> (i32, i32, i32) {
    %c0_i32 = arith.constant 0 : i32
    %c0_i32_0 = arith.constant 0 : i32
    return %arg0, %arg1, %c0_i32 : i32, i32, i32
  }
}

</mosaic_0001>

<bundles_post_ra>
// kernel: tpu_custom_call.1
= control target key start
LH: loop header
LB: loop body
LE: loop exit
PB: predicated region body
PF: predicated region fallthrough
CT: control target
= control target key end

     0   :  { %s1104_s0 = inlined_call_operand.hbm [shape: f32[4,8,128], index: 0, kind: input, shape index: {}]   ;;  %s1105_s1 = inlined_call_operand.hbm [shape: f32[4,8,128], index: 1, kind: input, shape index: {}]   ;;  %s1106_s2 = inlined_call_operand.hbm [shape: f32[4,8,128], index: 2, kind: input, shape index: {}]   ;;  %s1107_s3 = inlined_call_operand.hbm [shape: f32[4,8,128], index: 3, kind: output, shape index: {}]  }
   0x1   :  { %1111 = sst [smem:[#allocation18_spill]] %s1105_s1 }
   0x2   :  { %8 = vsyncpa [#allocation7], 0 }
   0x3   :  { %10 = vsyncpa [#allocation7 + $0x1], 0 }
   0x4   :  { %11 = vsyncpa [#allocation10], 0 }
   0x5   :  { %13 = vsyncpa [#allocation10 + $0x1], 0 }
   0x6   :  { %14 = vsyncpa [#allocation8], 0 }
   0x7   :  { %16 = vsyncpa [#allocation8 + $0x1], 0  ;;  %s901_s12 = smov 0   ;;  %s903_s13 = smov 0  }
   0x8   :  { %s905_s14 = smov 0   ;;  %s907_s15 = smov 0  }
   0x9   :  { %s909_s16 = smov 0   ;;  %s911_s17 = smov 0  }
   0xa LB: > { %1112 = sst [smem:[#allocation16_spill]] %s867_s16  ;;  %s932_s18 = sadd.s32 4294967295, %s871_s17   ;;  %s871_s17 = sphi %s911_s17, %s22_s17   ;;  %s867_s16 = sphi %s909_s16, %s1123_s16   ;;  %s863_s15 = sphi %s907_s15, %s1122_s15   ;;  %s859_s14 = sphi %s905_s14, %s1126_s14   ;;  %s855_s13 = sphi %s903_s13, %s1125_s13   ;;  %s851_s12 = sphi %s901_s12, %s1124_s12  }
   0xb   : > { %s584_s19 = sadd.s32 4294967294, %s871_s17   ;;  %s41_s20 = sadd.s32 1, %s867_s16 }
   0xc   : > { %s50_s21 = sadd.s32 1, %s859_s14  ;;  %p43_p0 = scmp.ge.s32.totalorder %s41_s20, 4 }
   0xd   : > { %p57_p1 = scmp.ne.s32.totalorder %s859_s14, %s855_s13  ;;  %p58_p2 = scmp.eq.s32.totalorder %s871_s17, 0 }
   0xe   : > { %p63_p3 = scmp.ne.s32.totalorder %s855_s13, %s851_s12  ;;  %s1128_s20 = smov (%p43_p0, %s41_s20), 0 }
   0xf   : > { %1113 = sst [smem:[#allocation17_spill]] %s1128_s20  ;;  %p944_p4 = por %p58_p2, %p57_p1 }
  0x10   : > { %p64_p5 = scmp.eq.s32.totalorder %s932_s18, 0  ;;  %s45_s23 = ssub.s32 %s867_s16, %s1128_s20 }
  0x11   : > { %p145_p6 = scmp.eq.s32.totalorder %s932_s18, 3  ;;  %p48_p7 = scmp.eq.s32.totalorder %s45_s23, 0 }
  0x12   : > { %p952_p8 = por %p64_p5, %p63_p3  ;;  %p151_p10 = scmp.eq.s32.totalorder %s584_s19, 3 }
  0x13   : > { %p956_p9 = por %p145_p6, %p57_p1  ;;  %p641_p12 = scmp.lt.s32.totalorder %s871_s17, 4 }
  0x14   : > { %s961_s26 = scalar_select %p48_p7, %s859_s14, %s50_s21  }
  0x15   : > { %p963_p11 = por %p151_p10, %p63_p3  ;;  %s1108_s28 = sand.u32 1, %s859_s14  }
  0x16   : > { %s971_s29 = sshll.u32 %s1108_s28, 3  ;;  %s974_s30 = sshll.u32 %s867_s16, 7 }
  0x17   : > { %p978_p13 = pnand %p641_p12, %p944_p4  ;;  %s190_s5 = sand.u32 1, %s871_s17  }
  0x18   : > { %s1119_s1 = sld [smem:[#allocation18_spill]]  ;;  %s194_s9 = scalar_lea.vmem [#allocation9], %s971_s29 }
  0x19   : > { %s202_s10 = sshll.u32 %s194_s9, 4  ;;  %p593_p0 = scmp.ge.s32.totalorder %s871_s17, 1  ;;  %s203_s10 = int_to_ptr.vmem [resolvable:$true] %s202_s10 }
  0x1a   : > { %p226_p1 = scmp.lt.s32.totalorder %s871_s17, 5  ;;  %s990_s11 = scalar_lea.sflag [#allocation10], %s190_s5 }
  0x1b   : > { %p705_p2 = pneg %p978_p13  ;;  %s716_s19 = scalar_lea.vmem %s203_s10, 128 }
  0x1c   : > { %p717_p3 = scmp.ne.s32.totalorder %s203_s10, %s716_s19  ;;  %s873_s21 = smov [#allocation9]  }
  0x1d   : > { %s721_s22 = sshll.u32 %s873_s21, 4  ;;  %s722_s22 = int_to_ptr.vmem [resolvable:$false] %s721_s22 }
  0x1e   : > { %s200_s8 = scalar_lea.hbm %s1119_s1, %s974_s30  ;;  %p719_p4 = pnand %p717_p3, %p705_p2 }
  0x1f   : > { %s723_s23 = scalar_lea.vmem %s722_s22, 256  ;;  %p724_p6 = scmp.lt.s32.totalorder %s203_s10, %s722_s22 }
  0x20   : > { %p720_p5 = pneg %p719_p4  ;;  %p725_p7 = scmp.lt.s32.totalorder %s723_s23, %s716_s19 }
  0x22   : > { %p726_p10 = por %p725_p7, %p724_p6 }
  0x24   : > { %p727_p12 = pnand %p726_p10, %p720_p5 }
  0x26   : > { %730 = shalt.err (!%p727_p12)
}
  0x27   : > { %633 = dma.hbm_to_vmem [thread:$0]  (!%p978_p13), %s200_s8, 128, %s203_s10, %s990_s11  }
  0x28   : > { %p1004_p3 = pnand %p593_p0, %p226_p1  ;;  %s181_s9 = scalar_lea.hbm %s1104_s0, %s974_s30 }
  0x29   : > { %s175_s19 = scalar_lea.vmem [#allocation6], %s971_s29  ;;  %s219_s28 = scalar_lea.hbm %s1106_s2, %s974_s30 }
  0x2a   : > { %s183_s21 = sshll.u32 %s175_s19, 4  ;;  %s1121_s1 = sand.u32 1, %s859_s14   ;;  %s184_s21 = int_to_ptr.vmem [resolvable:$true] %s183_s21 }
  0x2b   : > { %s172_s20 = scalar_lea.sflag [#allocation7], %s1121_s1  ;;  %s744_s8 = scalar_lea.vmem %s184_s21, 128 }
  0x2c   : > { %p745_p4 = scmp.ne.s32.totalorder %s184_s21, %s744_s8  ;;  %s874_s10 = smov [#allocation6]  }
  0x2d   : > { %s749_s16 = sshll.u32 %s874_s10, 4  ;;  %s750_s16 = int_to_ptr.vmem [resolvable:$false] %s749_s16 }
  0x2e   : > { %p747_p0 = pnand %p745_p4, %p705_p2  ;;  %s751_s6 = scalar_lea.vmem %s750_s16, 256 }
  0x2f   : > { %p752_p5 = scmp.lt.s32.totalorder %s184_s21, %s750_s16  ;;  %p753_p6 = scmp.lt.s32.totalorder %s751_s6, %s744_s8 }
  0x30   : > { %p748_p1 = pneg %p747_p0 }
  0x31   : > { %p754_p7 = por %p753_p6, %p752_p5 }
  0x33   : > { %p755_p10 = pnand %p754_p7, %p748_p1 }
  0x35   : > { %758 = shalt.err (!%p755_p10)
}
  0x36   : > { %630 = dma.hbm_to_vmem [thread:$0]  (!%p978_p13), %s181_s9, 128, %s184_s21, %s172_s20  }
  0x37   : > { %s213_s1 = scalar_lea.vmem [#allocation11], %s971_s29  ;;  %s875_s22 = smov [#allocation11]  }
  0x38   : > { %s221_s7 = sshll.u32 %s213_s1, 4  ;;  %s777_s16 = sshll.u32 %s875_s22, 4  ;;  %s222_s7 = int_to_ptr.vmem [resolvable:$true] %s221_s7  ;;  %s778_s16 = int_to_ptr.vmem [resolvable:$false] %s777_s16 }
  0x39   : > { %s772_s19 = scalar_lea.vmem %s222_s7, 128  ;;  %s779_s23 = scalar_lea.vmem %s778_s16, 256 }
  0x3a   : > { %p773_p12 = scmp.ne.s32.totalorder %s222_s7, %s772_s19  ;;  %p780_p1 = scmp.lt.s32.totalorder %s222_s7, %s778_s16 }
  0x3b   : > { %p781_p5 = scmp.lt.s32.totalorder %s779_s23, %s772_s19 }
  0x3c   : > { %p775_p4 = pnand %p773_p12, %p705_p2 }
  0x3d   : > { %p782_p6 = por %p781_p5, %p780_p1 }
  0x3e   : > { %p776_p0 = pneg %p775_p4 }
  0x40   : > { %p783_p7 = pnand %p782_p6, %p776_p0 }
  0x42   : > { %786 = shalt.err (!%p783_p7)
}
  0x43   : > { %636 = dma.hbm_to_vmem [thread:$0]  (!%p978_p13), %s219_s28, 128, %s222_s7, %s990_s11  }
  0x44   : > { %230 = sbr.rel (%p1004_p3) target bundleno = 871 (0x367), region = 32  ;;  %s1039_s9 = sand.u32 (!%p1004_p3), 1, %s855_s13  }
  0x45   : > { %s1042_s21 = sshll.u32 (!%p1004_p3), %s1039_s9, 3  ;;  %s233_s4 = scalar_lea.sflag (!%p1004_p3), [#allocation7], %s1039_s9 }
  0x46   : > { %s236_s8 = scalar_lea.vmem (!%p1004_p3), [#allocation6], %s1042_s21 }
  0x49   : > { %838 = dma.done.wait (%p952_p8), %s233_s4, 128  }
  0x4a   : > { %840 = vsyncadd (%p952_p8), %s233_s4, 4294967168  ;;  %s241_s28 = sand.u32 1, %s932_s18   ;;  %s245_s11 = scalar_lea.vmem [#allocation9], %s1042_s21 }
  0x4b   : > { %s242_s30 = scalar_lea.sflag [#allocation10], %s241_s28 }
  0x4c   : > { %842 = dma.done.wait (%p952_p8), %s242_s30, 256  }
  0x4d   : > { %844 = vsyncadd (%p952_p8), %s242_s30, 4294967040  ;;  %vm296_vm0 = vcmask 7168   ;;  %v876_v0 = vmov 0.0   ;;  %vm877_vm1 = vmmov 0   ;;  %v300_v1 = vld [vmem:[%s245_s11] sm:$0xff]  ;;  %v292_v2 = vld [vmem:[%s236_s8] sm:$0xff] }
  0x4e   : > { %298 = vst.msk [vmem:[#allocation4] sm:$0xff] %vm296_vm0, %v876_v0  ;;  %607 = vmatprep.subr.bf16.mxu0 %v876_v0  ;;  %609 = vmatprep.mubr.msk.bf16.mxu0 %vm877_vm1, %v876_v0  ;;  %v301_v3 = vpack.c.bf16 %v300_v1, %v300_v1  ;;  %v293_v4 = vmul.f32 0.25503486, %v292_v2  ;;  %v878_v7 = vmov -inf   ;;  %vm346_vm2 = vcmask 64512   ;;  %s254_s18 = scalar_lea.vmem [#allocation11], %s1042_s21 }
  0x4f   : > { %613 = vmatprep.subr.bf16.mxu1 %v876_v0  ;;  %615 = vmatprep.mubr.msk.bf16.mxu1 %vm877_vm1, %v876_v0  ;;  %297 = vst.msk [vmem:[#allocation3] sm:$0xff] %vm296_vm0, %v878_v7  ;;  %v879_v13 = vmov 0   ;;  %v302_v18 = vld [vmem:[%s254_s18] sm:$0xff]  ;;  %vm380_vm3 = vcmask 1043456   ;;  %s600_s24 = sshll.u32 %s863_s15, 7  ;;  %s286_s5 = scalar_lea.vmem [#allocation12], %s1042_s21 }
  0x50   : > { %608 = vmatpush3.bf16.xpose.msra.mxu0 %v301_v3  ;;  %v294_v5 = vpack.c.bf16 %v293_v4, %v293_v4  ;;  %695 = vset.pattern.permute.xlu0 %v879_v13  ;;  %v303_v19 = vpack.c.bf16 %v302_v18, %v302_v18  ;;  %s455_s10 = sshll.u32 %s286_s5, 4  ;;  %s453_s7 = scalar_lea.hbm %s1107_s3, %s600_s24  ;;  %s456_s10 = int_to_ptr.vmem [resolvable:$true] %s455_s10 }
  0x51   : > { %696 = vset.pattern.permute.xlu1 %v879_v13  ;;  %s441_s19 = scalar_lea.sflag [#allocation8], %s1039_s9  ;;  %s787_s22 = scalar_lea.vmem %s456_s10, 128 }
  0x52   : > { %295 = vst [vmem:[#allocation2] sm:$0xf] %v294_v5  ;;  %v382_v20 = vsel %vm380_vm3, %v303_v19, 0  ;;  %p788_p8 = scmp.ne.s32.totalorder %s456_s10, %s787_s22  ;;  %s880_s16 = smov [#allocation12]  }
  0x53   : > { %614 = vmatpush3.bf16.msra.mxu1 %v382_v20  ;;  %s791_s23 = sshll.u32 %s880_s16, 4  ;;  %s792_s23 = int_to_ptr.vmem [resolvable:$false] %s791_s23 }
  0x54   : > { %p789_p13 = pnand %p788_p8, %p956_p9  ;;  %s793_s15 = scalar_lea.vmem %s792_s23, 256 }
  0x55   : > { %v361_v28 = vld [vmem:[#allocation4] sm:$0xff]  ;;  %p794_p3 = scmp.lt.s32.totalorder %s456_s10, %s792_s23  ;;  %p795_p10 = scmp.lt.s32.totalorder %s793_s15, %s787_s22 }
  0x56   : > { %v345_v14 = vld [vmem:[#allocation3] sm:$0xff]  ;;  %p790_p2 = pneg %p789_p13 }
  0x57   : > { %p796_p12 = por %p795_p10, %p794_p3 }
  0x59   : > { %v304_v6 = vld [vmem:[#allocation2] sm:$0xf]  ;;  %p797_p4 = pnand %p796_p12, %p790_p2 }
  0x5a   : > { %610 = vmatmul.mubr.bf16.vlgmr.msra.gmra.mxu0 %v304_v6 }
 0x11a   : > { %v339_v8 = vpop.f32.mrf.mxu0 }
 0x11b   : > { %v347_v9 = vsel %vm346_vm2, %v339_v8, -inf }
 0x11c   : > { %348 = vmax.xlane.f32.xlu0 %v347_v9  ;;  %v611_v10 = vpop.f32.mrf.mxu0 }
 0x11e   : > { %v342_v11 = vpop.f32.mrf.mxu0 }
 0x120   : > { %v612_v12 = vpop.f32.mrf.mxu0 }
 0x1a5   : > { %v349_v15 = vpop.xlane.xlu0 %348 }
 0x1a6   : > { %v350_v16 = vmax.f32 %v345_v14, %v349_v15 }
 0x1a8   : > { %v351_v17 = vsub.f32 %v345_v14, %v350_v16  ;;  %426 = vst.msk [vmem:[#allocation3] sm:$0xff] %vm296_vm0, %v350_v16  ;;  %355 = vperm.xlu0 %695, %v350_v16  }
 0x223   : > { %v356_v21 = vpop.permute.xlu0 %355 }
 0x224   : > { %v358_v22 = vsub.f32 %v339_v8, %v356_v21 }
 0x226   : > { %v359_v23 = vpack.c.bf16 %v358_v22, %v358_v22 }
 0x228   : > { %697 = vpow.bf16 %v359_v23 }
 0x229   : > { %699 = vpow2.f32 %v351_v17 }
 0x236   : > { %v698_v24 = vpop.eup %697 }
 0x237   : > { %616 = vmatmul.mubr.msk.bf16.vlgmr.msra.gmra.mxu1 %vm346_vm2, %v698_v24  ;;  %v363_v25 = vunpack.c.l.bf16 %v698_v24  ;;  %v700_v27 = vpop.eup %699 }
 0x238   : > { %v362_v29 = vmul.f32 %v700_v27, %v361_v28 }
 0x239   : > { %v364_v26 = vsel %vm346_vm2, %v363_v25, 0.0 }
 0x23a   : > { %365 = vadd.xlane.f32.xlu1 %v364_v26 }
 0x24b   : > { %373 = vperm.xlu1 %696, %v700_v27  }
 0x2c3   : > { %v366_v30 = vpop.xlane.xlu1 %365 }
 0x2c4   : > { %v367_v31 = vadd.f32 %v366_v30, %v362_v29 }
 0x2c6   : > { %369 = vst.msk [vmem:[#allocation4] sm:$0xff] %vm296_vm0, %v367_v31 }
 0x2c7   : > { %v374_v38 = vpop.permute.xlu1 %373 }
 0x2c8   : > { %v376_v39 = vmul.f32 0.0, %v374_v38 }
 0x2cd   : > { %v430_v32 = vld [vmem:[#allocation4] sm:$0xff] }
 0x2ce   : > { %701 = vrcp.f32 %v430_v32 }
 0x2db   : > { %v702_v33 = vpop.eup %701 }
 0x2dc   : > { %435 = vperm.xlu1 %696, %v702_v33  }
 0x2f7   : > { %v418_v34 = vpop.f32.mrf.mxu1 }
 0x2f8   : > { %v424_v40 = vadd.f32 %v418_v34, %v376_v39 }
 0x2f9   : > { %v617_v35 = vpop.f32.mrf.mxu1 }
 0x2fb   : > { %v421_v36 = vpop.f32.mrf.mxu1 }
 0x2fd   : > { %v618_v37 = vpop.f32.mrf.mxu1 }
 0x357   : > { %v436_v41 = vpop.permute.xlu1 %435 }
 0x358   : > { %v438_v42 = vmul.f32 %v436_v41, %v424_v40 }
 0x35a   : > { %439 = vst [vmem:[%s286_s5] sm:$0xff] %v438_v42 }
 0x35b   : > { %800 = shalt.err (!%p797_p4)
}
 0x35c   : > { %s801_s20 = scalar_lea.hbm %s453_s7, 128  ;;  %s805_s21 = scalar_lea.hbm %s1107_s3, 512 }
 0x35d   : > { %p802_p0 = scmp.ne.s32.totalorder %s453_s7, %s801_s20  ;;  %p806_p6 = scmp.lt.s32.totalorder %s453_s7, %s1107_s3 }
 0x35e   : > { %p807_p7 = scmp.lt.s32.totalorder %s805_s21, %s801_s20 }
 0x35f   : > { %p803_p1 = pnand %p802_p0, %p956_p9 }
 0x360   : > { %p808_p8 = por %p807_p7, %p806_p6 }
 0x361   : > { %p804_p5 = pneg %p803_p1 }
 0x363   : > { %p809_p13 = pnand %p808_p8, %p804_p5 }
 0x365   : > { %812 = shalt.err (!%p809_p13)
}
 0x366   : > { %625 = dma.vmem_to_hbm [thread:$0]  (%p956_p9), %s456_s10, 128, %s453_s7, %s441_s19  }
 0x367 PF: > { %p642_p2 = scmp.ge.s32.totalorder %s871_s17, 2  ;;  %s467_s28 = sand.u32 1, %s851_s12  }
 0x368   : > { %s468_s30 = scalar_lea.sflag [#allocation8], %s467_s28 }
 0x369   : > { %p638_p3 = pnand %p642_p2, %p963_p11 }
 0x36b   : > { %p639_p10 = pneg %p638_p3 }
 0x36d   : > { %846 = dma.done.wait (%p639_p10), %s468_s30, 128  }
 0x36e   : > { %848 = vsyncadd (%p639_p10), %s468_s30, 4294967168  ;;  %s22_s17 = sadd.s32 1, %s871_s17   ;;  %s1122_s15 = sld [smem:[#allocation16_spill]] }
 0x36f   : > { %p19_p12 = scmp.ge.s32.totalorder %s22_s17, 6   ;;  %s1123_s16 = sld [smem:[#allocation17_spill]] }
 0x370   : > { %s1124_s12 = smov %s855_s13  ;;  %s1125_s13 = smov %s859_s14 }
 0x371   : > { %s1126_s14 = smov %s961_s26  ;;  %21 = sbr.rel (!%p19_p12) target bundleno = 10 (0xa), region = 109 }
 0x376   :  { %473 = vsyncpa [#allocation7], 1 }
 0x377   :  { %475 = vsyncpa [#allocation7 + $0x1], 1 }
 0x378   :  { %476 = vsyncpa [#allocation10], 1 }
 0x379   :  { %478 = vsyncpa [#allocation10 + $0x1], 1 }
 0x37a   :  { %479 = vsyncpa [#allocation8], 1 }
 0x37b   :  { %481 = vsyncpa [#allocation8 + $0x1], 1 }

</bundles_post_ra>
